<compile_context>
chip_gen: v6e
topology: v6e:2x2x1
jax: 0.10.0
libtpu: 0.0.40
codegen_flags: <defaults>
</compile_context>

<pallas_src>
import jax
import jax.numpy as jnp
import numpy as np
from jax.experimental import pallas as pl
from jax.experimental.pallas import tpu as pltpu


# --------------------------------------------------------------------------- #
# Kernel 1: condition MLP for the whole batch (tiny, one invocation).
# --------------------------------------------------------------------------- #
def _mlp_kernel(cond_ref, w1t_ref, b1_ref, w2t_ref, b2_ref, proj_ref):
    # cond: (B, Dc) f32, w1t: (Dc, F), w2t: (F, F), b1/b2: (1, F)  ->  proj: (B, F) f32
    h = jnp.dot(cond_ref[...], w1t_ref[...], preferred_element_type=jnp.float32) + b1_ref[...]
    h = jnp.where(h > 0, h, 0.2 * h)                               # LeakyReLU(0.2)
    proj_ref[...] = (
        jnp.dot(h, w2t_ref[...], preferred_element_type=jnp.float32) + b2_ref[...]
    )


def _project_conditions(conditions, W1, b1, W2, b2):
    """proj = Linear2(LeakyReLU(Linear1(conditions))) as one tiny Pallas call (f32)."""
    B, Dc = conditions.shape
    F = W1.shape[0]
    return pl.pallas_call(
        _mlp_kernel,
        out_shape=jax.ShapeDtypeStruct((B, F), jnp.float32),
    )(
        conditions.astype(jnp.float32),
        W1.astype(jnp.float32).T,                  # (Dc, F)
        b1.astype(jnp.float32).reshape(1, F),
        W2.astype(jnp.float32).T,                  # (F, F)
        b2.astype(jnp.float32).reshape(1, F),
    )


# --------------------------------------------------------------------------- #
# Kernel 2: batch-blocked streaming concat + spatial broadcast (HBM-bound part).
# --------------------------------------------------------------------------- #
def _make_concat_kernel(C, F, HW, Bt):
    def kernel(feat_ref, proj_ref, out_ref):
        # Passthrough feature channels: lane-dense copy (HW on the lane axis).
        # Note: if C is a multiple of the sublane tile (8 for f32 / 16 for bf16) both
        # stores below are fully unmasked; otherwise only the seam tile is masked.
        out_ref[:, 0:C, :] = feat_ref[...]
        # Lane-broadcast each image's projection column over H*W and append it.
        out_ref[:, C:C + F, :] = jnp.broadcast_to(proj_ref[...], (Bt, F, HW))
    return kernel


def _choose_batch_block(B, out_bytes_per_image, target_bytes=1 << 20):
    """Largest divisor of B giving ~1 MiB output slabs while keeping >= 2 grid steps."""
    if B <= 1:
        return 1
    bt = max(1, int(target_bytes // max(out_bytes_per_image, 1)))
    bt = min(bt, B // 2)          # >= 2 grid steps -> both v7x TensorCores get work
    bt = max(bt, 1)
    while B % bt != 0:            # exact grid, no partial batch blocks
        bt -= 1
    return bt


def conditional_projection_forward(conditions, features, params):
    """Pallas implementation of ConditionalProjection.forward.

    conditions: (B, Dc); features: (B, C, H, W) in NCHW, any float dtype.
    params: (W1, b1, W2, b2) in PyTorch Linear layout (out_features, in_features).
    Returns (B, C + F, H, W) in features.dtype.
    """
    W1, b1, W2, b2 = params
    B, _ = conditions.shape
    _, C, H, W = features.shape
    F = W1.shape[0]
    HW = H * W
    out_dtype = features.dtype

    # Keep HW a multiple of 128 (lane width) for unmasked, lane-dense stores;
    # other sizes still run correctly but fall back to masked stores.
    feat2d = features.reshape(B, C, HW)                        # native dtype, no cast

    # Tiny 2-layer MLP over the whole batch (f32 accumulate), cast once to out dtype.
    proj = _project_conditions(conditions, W1, b1, W2, b2)     # (B, F) f32
    proj3 = proj.astype(out_dtype).reshape(B, F, 1)

    itemsize = jnp.dtype(out_dtype).itemsize
    Bt = _choose_batch_block(B, (C + F) * HW * itemsize)
    grid = (B // Bt,)

    # Double-buffered per-step footprint with headroom; raised above v5e's small
    # default scoped VMEM, clamped well under v7x's 64 MiB physical VMEM.
    step_bytes = (Bt * C * HW + Bt * F + Bt * (C + F) * HW) * itemsize
    vmem_limit = int(min(max(4 * step_bytes, 32 * 1024 * 1024), 48 * 1024 * 1024))

    out2d = pl.pallas_call(
        _make_concat_kernel(C, F, HW, Bt),
        out_shape=jax.ShapeDtypeStruct((B, C + F, HW), out_dtype),
        grid=grid,
        in_specs=[
            pl.BlockSpec((Bt, C, HW), lambda i: (i, 0, 0)),    # feature slab
            pl.BlockSpec((Bt, F, 1), lambda i: (i, 0, 0)),     # per-image proj column
        ],
        out_specs=pl.BlockSpec((Bt, C + F, HW), lambda i: (i, 0, 0)),
        compiler_params=pltpu.CompilerParams(
            dimension_semantics=("parallel",),
            vmem_limit_bytes=vmem_limit,
        ),
    )(feat2d, proj3)

    return out2d.reshape(B, C + F, H, W)


# --------------------------------------------------------------------------- #
# Params + pure-JAX reference.
# --------------------------------------------------------------------------- #
def init_params(key, Dc, F):
    """Deterministic synthetic params in PyTorch Linear layout (out_features, in_features)."""
    k1, k2, k3, k4 = jax.random.split(key, 4)
    W1 = jax.random.uniform(k1, (F, Dc), jnp.float32, -1.0, 1.0) / np.sqrt(Dc)
    b1 = jax.random.uniform(k2, (F,), jnp.float32, -1.0, 1.0) / np.sqrt(Dc)
    W2 = jax.random.uniform(k3, (F, F), jnp.float32, -1.0, 1.0) / np.sqrt(F)
    b2 = jax.random.uniform(k4, (F,), jnp.float32, -1.0, 1.0) / np.sqrt(F)
    return (W1, b1, W2, b2)


def reference(conditions, features, params):
    """Pure-JAX mirror of the PyTorch forward."""
    W1, b1, W2, b2 = params
    h = conditions @ W1.T + b1
    h = jnp.where(h > 0, h, 0.2 * h)
    proj = h @ W2.T + b2
    B, C, H, Wd = features.shape
    proj_map = jnp.broadcast_to(proj[:, :, None, None], (B, proj.shape[1], H, Wd))
    return jnp.concatenate([features, proj_map.astype(features.dtype)], axis=1)


if __name__ == "__main__":
    key = jax.random.PRNGKey(0)
    kc, kf, kp = jax.random.split(key, 3)

    B, Dc, Fdim, C, H, W = 2, 8, 32, 4, 16, 16
    conditions = jax.random.normal(kc, (B, Dc), jnp.float32)
    features = jax.random.normal(kf, (B, C, H, W), jnp.float32)
    params = init_params(kp, Dc, Fdim)

    out = conditional_projection_forward(conditions, features, params)
    out = jax.block_until_ready(out)

    ref = reference(conditions, features, params)
    np.testing.assert_allclose(np.asarray(out), np.asarray(ref), rtol=1e-5, atol=1e-5)

    print("KERNEL_OK")
</pallas_src>

<mosaic_0001>
module attributes {stable_mosaic.version = 11 : i64} {
  func.func @_mlp_kernel(%arg0: memref<2x8xf32, #tpu.memory_space<vmem>>, %arg1: memref<8x32xf32, #tpu.memory_space<vmem>>, %arg2: memref<1x32xf32, #tpu.memory_space<vmem>>, %arg3: memref<32x32xf32, #tpu.memory_space<vmem>>, %arg4: memref<1x32xf32, #tpu.memory_space<vmem>>, %arg5: memref<2x32xf32, #tpu.memory_space<vmem>>) attributes {dimension_semantics = [], scalar_prefetch = 0 : i64, scratch_operands = 0 : i64, tpu.core_type = #tpu.core_type<tc>} {
    %c0 = arith.constant 0 : index
    %c0_0 = arith.constant 0 : index
    %0 = vector.load %arg0[%c0, %c0_0] : memref<2x8xf32, #tpu.memory_space<vmem>>, vector<2x8xf32>
    %c0_1 = arith.constant 0 : index
    %c0_2 = arith.constant 0 : index
    %1 = vector.load %arg1[%c0_1, %c0_2] : memref<8x32xf32, #tpu.memory_space<vmem>>, vector<8x32xf32>
    %cst = arith.constant dense<0.000000e+00> : vector<2x32xf32>
    %2 = tpu.matmul %0, %1, %cst {dimension_numbers = #tpu.dot_dimension_numbers<[1], [0], [0], [1], [0, 0, 1, 1], [], []>} : vector<2x8xf32>, vector<8x32xf32>, vector<2x32xf32> -> vector<2x32xf32>
    %c0_3 = arith.constant 0 : index
    %c0_4 = arith.constant 0 : index
    %3 = vector.load %arg2[%c0_3, %c0_4] : memref<1x32xf32, #tpu.memory_space<vmem>>, vector<1x32xf32>
    %4 = vector.broadcast %3 : vector<1x32xf32> to vector<2x32xf32>
    %5 = arith.addf %2, %4 : vector<2x32xf32>
    %cst_5 = arith.constant 0.000000e+00 : f32
    %6 = vector.broadcast %cst_5 : f32 to vector<2x32xf32>
    %7 = arith.cmpf ogt, %5, %6 : vector<2x32xf32>
    %cst_6 = arith.constant 2.000000e-01 : f32
    %8 = vector.broadcast %cst_6 : f32 to vector<2x32xf32>
    %9 = arith.mulf %8, %5 : vector<2x32xf32>
    %10 = arith.select %7, %5, %9 : vector<2x32xi1>, vector<2x32xf32>
    %c0_7 = arith.constant 0 : index
    %c0_8 = arith.constant 0 : index
    %11 = vector.load %arg3[%c0_7, %c0_8] : memref<32x32xf32, #tpu.memory_space<vmem>>, vector<32x32xf32>
    %cst_9 = arith.constant dense<0.000000e+00> : vector<2x32xf32>
    %12 = tpu.matmul %10, %11, %cst_9 {dimension_numbers = #tpu.dot_dimension_numbers<[1], [0], [0], [1], [0, 0, 1, 1], [], []>} : vector<2x32xf32>, vector<32x32xf32>, vector<2x32xf32> -> vector<2x32xf32>
    %c0_10 = arith.constant 0 : index
    %c0_11 = arith.constant 0 : index
    %13 = vector.load %arg4[%c0_10, %c0_11] : memref<1x32xf32, #tpu.memory_space<vmem>>, vector<1x32xf32>
    %14 = vector.broadcast %13 : vector<1x32xf32> to vector<2x32xf32>
    %15 = arith.addf %12, %14 : vector<2x32xf32>
    %c0_12 = arith.constant 0 : index
    %c0_13 = arith.constant 0 : index
    %16 = vector.load %arg5[%c0_12, %c0_13] : memref<2x32xf32, #tpu.memory_space<vmem>>, vector<2x32xf32>
    tpu.vector_store %arg5[%c0_12, %c0_13], %15 {strides = array<i32>} : memref<2x32xf32, #tpu.memory_space<vmem>>, vector<2x32xf32>,
    return
  }
}

</mosaic_0001>

<bundles_post_ra>
// kernel: tpu_custom_call.1
= control target key start
LH: loop header
LB: loop body
LE: loop exit
PB: predicated region body
PF: predicated region fallthrough
CT: control target
= control target key end

     0   :  { %10 = vsyncpa [#allocation3], 0  ;;  %s424_s0 = inlined_call_operand.hbm [shape: f32[2,8], index: 0, kind: input, shape index: {}]   ;;  %s425_s1 = inlined_call_operand.hbm [shape: f32[8,32], index: 1, kind: input, shape index: {}]   ;;  %s426_s2 = inlined_call_operand.vmem [shape: f32[1,32], index: 2, kind: input, shape index: {}]   ;;  %s427_s3 = inlined_call_operand.hbm [shape: f32[32,32], index: 3, kind: input, shape index: {}]   ;;  %s428_s4 = inlined_call_operand.vmem [shape: f32[1,32], index: 4, kind: input, shape index: {}]   ;;  %s429_s5 = inlined_call_operand.hbm [shape: f32[2,32], index: 5, kind: output, shape index: {}]  }
   0x1   :  { %11 = vsyncpa [#allocation6], 0 }
   0x2   :  { %12 = vsyncpa [#allocation4], 0  ;;  %s368_s18 = smov [#allocation5]   ;;  %s369_s20 = smov [#allocation2]  }
   0x3   :  { %s29_s19 = sshll.u32 %s368_s18, 4  ;;  %s19_s21 = sshll.u32 %s369_s20, 4  ;;  %s30_s19 = int_to_ptr.vmem [resolvable:$true] %s29_s19  ;;  %s20_s21 = int_to_ptr.vmem [resolvable:$true] %s19_s21 }
   0x4   :  { %s290_s22 = scalar_lea.vmem %s30_s19, 128  ;;  %p295_p1 = scmp.lt.s32.totalorder %s30_s19, %s30_s19 }
   0x5   :  { %p291_p0 = scmp.ne.s32.totalorder %s30_s19, %s290_s22  ;;  %p296_p2 = scmp.lt.s32.totalorder %s290_s22, %s290_s22 }
   0x7   :  { %p297_p3 = por %p296_p2, %p295_p1 }
   0x9   :  { %p298_p4 = pnand %p297_p3, %p291_p0 }
   0xb   :  { %301 = shalt.err (!%p298_p4)
}
   0xc   :  { %32 = dma.hbm_to_vmem [thread:$0]  %s425_s1, 128, %s30_s19, [#allocation6]  }
   0xd   :  { %s310_s25 = scalar_lea.vmem %s20_s21, 32  ;;  %p315_p6 = scmp.lt.s32.totalorder %s20_s21, %s20_s21 }
   0xe   :  { %p311_p5 = scmp.ne.s32.totalorder %s20_s21, %s310_s25  ;;  %p316_p7 = scmp.lt.s32.totalorder %s310_s25, %s310_s25 }
  0x10   :  { %p317_p8 = por %p316_p7, %p315_p6 }
  0x12   :  { %p318_p9 = pnand %p317_p8, %p311_p5 }
  0x14   :  { %321 = shalt.err (!%p318_p9)
}
  0x15   :  { %22 = dma.hbm_to_vmem [thread:$0]  %s424_s0, 32, %s20_s21, [#allocation3]  }
  0x16   :  { %s370_s28 = smov [#allocation7]  }
  0x17   :  { %s40_s29 = sshll.u32 %s370_s28, 4  ;;  %s41_s29 = int_to_ptr.vmem [resolvable:$true] %s40_s29 }
  0x18   :  { %s330_s30 = scalar_lea.vmem %s41_s29, 512  ;;  %p335_p11 = scmp.lt.s32.totalorder %s41_s29, %s41_s29 }
  0x19   :  { %p331_p10 = scmp.ne.s32.totalorder %s41_s29, %s330_s30  ;;  %p336_p12 = scmp.lt.s32.totalorder %s330_s30, %s330_s30 }
  0x1b   :  { %p337_p13 = por %p336_p12, %p335_p11 }
  0x1d   :  { %p338_p0 = pnand %p337_p13, %p331_p10 }
  0x1f   :  { %341 = shalt.err (!%p338_p0)
}
  0x20   :  { %s371_s1 = smov 128   ;;  %s372_s6 = smov 8  }
  0x21   :  { %46 = dma.hbm_to_vmem [thread:$0]  %s427_s3, 512, %s41_s29, [#allocation6], %s371_s1, %s371_s1, %s372_s6  }
  0x22   :  { %362 = dma.done.wait [#allocation3], 32  }
  0x23   :  { %363 = vsyncadd [#allocation3], 4294967264 }
  0x24   :  { %364 = dma.done.wait [#allocation6], 640  }
  0x25   :  { %365 = vsyncadd [#allocation6], 4294966656  ;;  %v373_v0 = vmov 0.0   ;;  %vm374_vm0 = vmmov 0   ;;  %vm67_vm1 = vcmask 64512   ;;  %v59_v1 = vld [vmem:[#allocation5] sm:$0xff] }
  0x26   :  { %258 = vmatprep.subr.mxu0 %v373_v0  ;;  %260 = vmatprep.mubr.msk.f32.mxu0 %vm374_vm0, %v373_v0  ;;  %v58_v2 = vld [vmem:[#allocation2] sm:$0x3]  ;;  %v147_v3 = vld [vmem:[#allocation7 + $0x18] sm:$0xff]  ;;  %v145_v5 = vld [vmem:[#allocation7 + $0x8] sm:$0xff]  ;;  %vm155_vm3 = vcmask 261120   ;;  %s375_s11 = smov [#allocation8]  }
  0x27   :  { %263 = vmatprep.subr.mxu1 %v373_v0  ;;  %271 = vmatprep.mubr.msk.f32.mxu1 %vm374_vm0, %v373_v0  ;;  %v146_v4 = vld [vmem:[#allocation7 + $0x10] sm:$0xff]  ;;  %v144_v6 = vld [vmem:[#allocation7] sm:$0xff]  ;;  %s237_s12 = sshll.u32 %s375_s11, 4  ;;  %vm229_vm4 = vcmask 254976   ;;  %s238_s12 = int_to_ptr.vmem [resolvable:$true] %s237_s12 }
  0x28   :  { %259 = vmatpush3.msra.mxu0 %v59_v1  ;;  %264 = vmatpush3.msra.mxu1 %v147_v3  ;;  %v247_v7 = vld [vmem:[%s426_s2] ss:$0 sm:$0xff]  ;;  %s342_s2 = scalar_lea.vmem %s238_s12, 32  ;;  %p347_p2 = scmp.lt.s32.totalorder %s238_s12, %s238_s12 }
  0x29   :  { %261 = vmatmul.mubr.msk.f32.vlgmr.msra.gmra.mxu0 %vm67_vm1, %v58_v2  ;;  %265 = vmatprep.subr.mxu1 %v373_v0  ;;  %v249_v13 = vld [vmem:[%s428_s4] ss:$0 sm:$0xff]  ;;  %p343_p1 = scmp.ne.s32.totalorder %s238_s12, %s342_s2  ;;  %p348_p3 = scmp.lt.s32.totalorder %s342_s2, %s342_s2 }
  0x2a   :  { %266 = vmatpush3.msra.mxu1 %v146_v4 }
  0x2b   :  { %267 = vmatprep.subr.mxu1 %v373_v0  ;;  %p349_p4 = por %p348_p3, %p347_p2 }
  0x2c   :  { %268 = vmatpush3.msra.mxu1 %v145_v5 }
  0x2d   :  { %269 = vmatprep.subr.mxu1 %v373_v0  ;;  %p350_p5 = pnand %p349_p4, %p343_p1 }
  0x2e   :  { %270 = vmatpush3.msra.mxu1 %v144_v6 }
  0xe9   :  { %v137_v8 = vpop.f32.mrf.mxu0 }
  0xea   :  { %v138_v9 = vadd.f32 %v247_v7, %v137_v8 }
  0xeb   :  { %v262_v10 = vpop.f32.mrf.mxu0 }
  0xec   :  { %vm141_vm2 = vcmp.gt.f32.partialorder %v138_v9, 0.0  ;;  %v142_v11 = vmul.f32 0.2, %v138_v9 }
  0xee   :  { %v143_v12 = vsel %vm141_vm2, %v138_v9, %v142_v11 }
  0xef   :  { %272 = vmatmul.mubr.msk.f32.vlgmr.msra.gmra.mxu1 %vm155_vm3, %v143_v12 }
 0x1af   :  { %v225_v14 = vpop.f32.mrf.mxu1 }
 0x1b0   :  { %v226_v15 = vadd.f32 %v249_v13, %v225_v14 }
 0x1b1   :  { %v273_v16 = vpop.f32.mrf.mxu1 }
 0x1b2   :  { %230 = vst.msk [vmem:[#allocation8] sm:$0x3] %vm229_vm4, %v226_v15 }
 0x1b3   :  { %353 = shalt.err (!%p350_p5)
}
 0x1b4   :  { %240 = dma.vmem_to_hbm [thread:$0]  %s238_s12, 32, %s429_s5, [#allocation4]  }
 0x1b5   :  { %366 = dma.done.wait [#allocation4], 32  }
 0x1b6   :  { %367 = vsyncadd [#allocation4], 4294967264 }
 0x1b7   :  { %244 = vsyncpa [#allocation3], 1 }
 0x1b8   :  { %245 = vsyncpa [#allocation6], 1 }
 0x1b9   :  { %246 = vsyncpa [#allocation4], 1 }

</bundles_post_ra>
